<compile_context>
chip_gen: v5e
topology: v5e:2x2
jax: 0.10.0
libtpu: 0.0.40
codegen_flags: <defaults>
</compile_context>

<pallas_src>
import jax
import jax.numpy as jnp
from jax.experimental import pallas as pl
from jax.experimental.pallas import tpu as pltpu


def _round_up(x, m):
    return ((x + m - 1) // m) * m


def _tensorcores_per_chip():
    """Best-effort TensorCores-per-chip: v5e/v6e -> 1, megacore (v4/v5p/v7x) -> 2.

    Defaults to 2 (apply the >=2-tile split) when the device kind is unknown;
    the cost of a needless split on a 1-TC chip is one extra ~0.35us grid step.
    """
    try:
        kind = jax.devices()[0].device_kind.lower()
    except Exception:
        return 2
    if any(t in kind for t in ("lite", "v5e", "v6e")):
        return 1
    return 2


def _recip(x):
    """EUP approximate reciprocal + one Newton step (~f32 exact, VALU-light)."""
    r = pl.reciprocal(x, approx=True)
    return r * (2.0 - x * r)


def _keypoint_loss_kernel(slab_ref, area_ref, out_ref):
    """One lane-dense N-tile of the keypoint loss.

    slab: (5, K, TN) f32 -- [0]=px*s, [1]=py*s, [2]=gx*s, [3]=gy*s, [4]=mask,
                            with s_k = 1/(2*sqrt(2)*sigma_k) pre-folded.
    area: (1, TN)    f32
    out:  (1, TN)    f32 -- per-instance partial sums (sum over K of loss terms)
    """
    px = slab_ref[0]                       # (K, TN)
    py = slab_ref[1]
    gx = slab_ref[2]
    gy = slab_ref[3]
    mask = slab_ref[4]
    area = area_ref[...]                   # (1, TN)

    k = mask.shape[0]

    # d / (8*sigma^2) == (dx*s)^2 + (dy*s)^2 with pre-scaled coordinates.
    dx = px - gx
    dy = py - gy
    d = dx * dx + dy * dy                  # (K, TN)

    # kpt_loss_factor = K / (count of valid keypoints per instance + 1e-9).
    # Keep the (mask != 0) compare: exact module semantics even for non-binary
    # masks (review pt.5 caveat); the VALU has ample slack in this mem-bound body.
    cnt = jnp.sum((mask != 0).astype(jnp.float32), axis=0, keepdims=True)   # (1, TN)
    kpt_loss_factor = jnp.float32(k) * _recip(cnt + 1e-9)                   # (1, TN)

    # e = d / ((2*sigma)^2 * (area + 1e-9) * 2) == d_scaled / (area + 1e-9)
    e = d * _recip(area + 1e-9)                                             # (K, TN)

    val = (1.0 - jnp.exp(-e)) * mask * kpt_loss_factor                      # (K, TN)

    # Sublane-only (K) reduce; cross-lane sum + the mean happen in the wrapper.
    out_ref[...] = jnp.sum(val, axis=0, keepdims=True)                      # (1, TN)


def keypoint_loss(pred_kpts, gt_kpts, kpt_mask, area, sigmas, *, tile_n=8192):
    """Pallas implementation mirroring ultralytics KeypointLoss.forward.

    pred_kpts: (N, K, >=2) float
    gt_kpts:   (N, K, >=2) float
    kpt_mask:  (N, K)      float
    area:      (N, 1)      float
    sigmas:    (K,)        float
    returns scalar float32
    """
    pred_kpts = pred_kpts.astype(jnp.float32)
    gt_kpts = gt_kpts.astype(jnp.float32)
    kpt_mask = kpt_mask.astype(jnp.float32)
    area = area.astype(jnp.float32)
    sigmas = sigmas.astype(jnp.float32)

    n, k = kpt_mask.shape

    # ---- tile sizing: fat tiles, padded to the actual problem, >=2 on megacore ----
    n_pad128 = _round_up(n, 128)
    tile_target = max(128, min(_round_up(tile_n, 128), n_pad128))
    num_tiles = pl.cdiv(n_pad128, tile_target)
    if n_pad128 >= 256 and num_tiles < 2 and _tensorcores_per_chip() >= 2:
        num_tiles = 2                       # let ("parallel",) shard across both TCs
    tile = _round_up(pl.cdiv(n_pad128, num_tiles), 128)
    n_pad = num_tiles * tile
    pad_n = n_pad - n

    # ---- single fused layout op: packed (5, K, N) slab, coords pre-scaled ----
    # s_k = 1/(2*sqrt(2)*sigma_k); multiply fuses into the mandatory layout copy.
    s = ((1.0 / (8.0 ** 0.5)) / sigmas).reshape(1, k)        # (1, K)
    slab = jnp.stack(
        [pred_kpts[..., 0] * s, pred_kpts[..., 1] * s,
         gt_kpts[..., 0] * s, gt_kpts[..., 1] * s,
         kpt_mask],
        axis=0)                                              # (5, N, K)
    slab = jnp.transpose(slab, (0, 2, 1))                    # (5, K, N): N lane-dense
    area_t = area.reshape(1, n)                              # (1, N)

    if pad_n:
        slab = jnp.pad(slab, ((0, 0), (0, 0), (0, pad_n)))   # mask==0 => zero contrib
        area_t = jnp.pad(area_t, ((0, 0), (0, pad_n)))

    partial = pl.pallas_call(
        _keypoint_loss_kernel,
        out_shape=jax.ShapeDtypeStruct((1, n_pad), jnp.float32),
        grid=(num_tiles,),
        in_specs=[
            pl.BlockSpec((5, k, tile), lambda i: (0, 0, i)),   # slab (5,K,TN)
            pl.BlockSpec((1, tile), lambda i: (0, i)),         # area (1,TN)
        ],
        out_specs=pl.BlockSpec((1, tile), lambda i: (0, i)),   # partials (1,TN)
        compiler_params=pltpu.CompilerParams(
            dimension_semantics=("parallel",),    # independent N-tiles (megacore)
            vmem_limit_bytes=32 * 1024 * 1024,    # ~8.5 MiB needed at tile=8192
        ),
    )(slab, area_t)

    # Final tiny reduction + mean over the TRUE N*K (padding is mask-zeroed).
    return jnp.sum(partial) / jnp.float32(n * k)


def keypoint_loss_ref(pred_kpts, gt_kpts, kpt_mask, area, sigmas):
    """Pure-JAX reference identical to the PyTorch module."""
    d = (pred_kpts[..., 0] - gt_kpts[..., 0]) ** 2 + (pred_kpts[..., 1] - gt_kpts[..., 1]) ** 2
    kpt_loss_factor = kpt_mask.shape[1] / (jnp.sum(kpt_mask != 0, axis=1) + 1e-9)
    e = d / ((2 * sigmas) ** 2 * (area + 1e-9) * 2)
    return jnp.mean(kpt_loss_factor.reshape(-1, 1) * ((1 - jnp.exp(-e)) * kpt_mask))


if __name__ == "__main__":
    N, K = 8, 17  # N instances, K keypoints per instance (COCO-style)

    key = jax.random.PRNGKey(0)
    k1, k2, k3, k4 = jax.random.split(key, 4)

    pred_kpts = jax.random.normal(k1, (N, K, 3), dtype=jnp.float32) * 4.0
    gt_kpts = jax.random.normal(k2, (N, K, 3), dtype=jnp.float32) * 4.0
    kpt_mask = (jax.random.uniform(k3, (N, K)) > 0.3).astype(jnp.float32)
    area = jax.random.uniform(k4, (N, 1), minval=10.0, maxval=100.0).astype(jnp.float32)
    sigmas = jnp.linspace(0.025, 0.107, K, dtype=jnp.float32)

    loss = jax.block_until_ready(keypoint_loss(pred_kpts, gt_kpts, kpt_mask, area, sigmas))
    ref = jax.block_until_ready(keypoint_loss_ref(pred_kpts, gt_kpts, kpt_mask, area, sigmas))
    assert jnp.allclose(loss, ref, rtol=1e-5, atol=1e-6), (loss, ref)

    print("KERNEL_OK")
</pallas_src>

<mosaic_0001>
module attributes {stable_mosaic.version = 11 : i64} {
  func.func @_keypoint_loss_kernel(%arg0: i32, %arg1: memref<5x17x128xf32, #tpu.memory_space<vmem>>, %arg2: memref<1x128xf32, #tpu.memory_space<vmem>>, %arg3: memref<1x128xf32, #tpu.memory_space<vmem>>) attributes {dimension_semantics = [#tpu.dimension_semantics<parallel>], iteration_bounds = array<i64: 1>, scalar_prefetch = 0 : i64, scratch_operands = 0 : i64, tpu.core_type = #tpu.core_type<tc>, window_params = [{transform_indices = @transform_0, window_bounds = array<i64: 5, 17, 128>}, {transform_indices = @transform_1, window_bounds = array<i64: 1, 128>}, {transform_indices = @transform_2, window_bounds = array<i64: 1, 128>}]} {
    %c0 = arith.constant 0 : index
    %c0_0 = arith.constant 0 : index
    %c0_1 = arith.constant 0 : index
    %0 = vector.load %arg1[%c0, %c0_0, %c0_1] : memref<5x17x128xf32, #tpu.memory_space<vmem>>, vector<1x17x128xf32>
    %1 = vector.shape_cast %0 : vector<1x17x128xf32> to vector<17x128xf32>
    %c1 = arith.constant 1 : index
    %c0_2 = arith.constant 0 : index
    %c0_3 = arith.constant 0 : index
    %2 = vector.load %arg1[%c1, %c0_2, %c0_3] : memref<5x17x128xf32, #tpu.memory_space<vmem>>, vector<1x17x128xf32>
    %3 = vector.shape_cast %2 : vector<1x17x128xf32> to vector<17x128xf32>
    %c2 = arith.constant 2 : index
    %c0_4 = arith.constant 0 : index
    %c0_5 = arith.constant 0 : index
    %4 = vector.load %arg1[%c2, %c0_4, %c0_5] : memref<5x17x128xf32, #tpu.memory_space<vmem>>, vector<1x17x128xf32>
    %5 = vector.shape_cast %4 : vector<1x17x128xf32> to vector<17x128xf32>
    %c3 = arith.constant 3 : index
    %c0_6 = arith.constant 0 : index
    %c0_7 = arith.constant 0 : index
    %6 = vector.load %arg1[%c3, %c0_6, %c0_7] : memref<5x17x128xf32, #tpu.memory_space<vmem>>, vector<1x17x128xf32>
    %7 = vector.shape_cast %6 : vector<1x17x128xf32> to vector<17x128xf32>
    %c4 = arith.constant 4 : index
    %c0_8 = arith.constant 0 : index
    %c0_9 = arith.constant 0 : index
    %8 = vector.load %arg1[%c4, %c0_8, %c0_9] : memref<5x17x128xf32, #tpu.memory_space<vmem>>, vector<1x17x128xf32>
    %9 = vector.shape_cast %8 : vector<1x17x128xf32> to vector<17x128xf32>
    %c0_10 = arith.constant 0 : index
    %c0_11 = arith.constant 0 : index
    %10 = vector.load %arg2[%c0_10, %c0_11] : memref<1x128xf32, #tpu.memory_space<vmem>>, vector<1x128xf32>
    %11 = arith.subf %1, %5 : vector<17x128xf32>
    %12 = arith.subf %3, %7 : vector<17x128xf32>
    %13 = arith.mulf %11, %11 : vector<17x128xf32>
    %14 = arith.mulf %12, %12 : vector<17x128xf32>
    %15 = arith.addf %13, %14 : vector<17x128xf32>
    %cst = arith.constant 0.000000e+00 : f32
    %16 = vector.broadcast %cst : f32 to vector<17x128xf32>
    %17 = arith.cmpf one, %9, %16 : vector<17x128xf32>
    %18 = arith.extui %17 : vector<17x128xi1> to vector<17x128xi32>
    %19 = arith.sitofp %18 : vector<17x128xi32> to vector<17x128xf32>
    %cst_12 = arith.constant dense<0.000000e+00> : vector<128xf32>
    %20 = vector.multi_reduction <add>, %19, %cst_12 [0] : vector<17x128xf32> to vector<128xf32>
    %21 = vector.shape_cast %20 : vector<128xf32> to vector<1x128xf32>
    %cst_13 = arith.constant 9.99999971E-10 : f32
    %22 = vector.broadcast %cst_13 : f32 to vector<1x128xf32>
    %23 = arith.addf %21, %22 : vector<1x128xf32>
    %24 = tpu.reciprocal %23 {approx = true} : vector<1x128xf32> -> vector<1x128xf32>
    %25 = arith.mulf %23, %24 : vector<1x128xf32>
    %cst_14 = arith.constant 2.000000e+00 : f32
    %26 = vector.broadcast %cst_14 : f32 to vector<1x128xf32>
    %27 = arith.subf %26, %25 : vector<1x128xf32>
    %28 = arith.mulf %24, %27 : vector<1x128xf32>
    %cst_15 = arith.constant 1.700000e+01 : f32
    %29 = vector.broadcast %cst_15 : f32 to vector<1x128xf32>
    %30 = arith.mulf %29, %28 : vector<1x128xf32>
    %cst_16 = arith.constant 9.99999971E-10 : f32
    %31 = vector.broadcast %cst_16 : f32 to vector<1x128xf32>
    %32 = arith.addf %10, %31 : vector<1x128xf32>
    %33 = tpu.reciprocal %32 {approx = true} : vector<1x128xf32> -> vector<1x128xf32>
    %34 = arith.mulf %32, %33 : vector<1x128xf32>
    %cst_17 = arith.constant 2.000000e+00 : f32
    %35 = vector.broadcast %cst_17 : f32 to vector<1x128xf32>
    %36 = arith.subf %35, %34 : vector<1x128xf32>
    %37 = arith.mulf %33, %36 : vector<1x128xf32>
    %38 = vector.broadcast %37 : vector<1x128xf32> to vector<17x128xf32>
    %39 = arith.mulf %15, %38 : vector<17x128xf32>
    %cst_18 = arith.constant 0.000000e+00 : f32
    %40 = vector.broadcast %cst_18 : f32 to vector<17x128xf32>
    %41 = arith.subf %40, %39 : vector<17x128xf32>
    %42 = math.exp %41 : vector<17x128xf32>
    %cst_19 = arith.constant 1.000000e+00 : f32
    %43 = vector.broadcast %cst_19 : f32 to vector<17x128xf32>
    %44 = arith.subf %43, %42 : vector<17x128xf32>
    %45 = arith.mulf %44, %9 : vector<17x128xf32>
    %46 = vector.broadcast %30 : vector<1x128xf32> to vector<17x128xf32>
    %47 = arith.mulf %45, %46 : vector<17x128xf32>
    %cst_20 = arith.constant dense<0.000000e+00> : vector<128xf32>
    %48 = vector.multi_reduction <add>, %47, %cst_20 [0] : vector<17x128xf32> to vector<128xf32>
    %49 = vector.shape_cast %48 : vector<128xf32> to vector<1x128xf32>
    %c0_21 = arith.constant 0 : index
    %c0_22 = arith.constant 0 : index
    %50 = vector.load %arg3[%c0_21, %c0_22] : memref<1x128xf32, #tpu.memory_space<vmem>>, vector<1x128xf32>
    tpu.vector_store %arg3[%c0_21, %c0_22], %49 {strides = array<i32>} : memref<1x128xf32, #tpu.memory_space<vmem>>, vector<1x128xf32>,
    return
  }
  func.func @transform_0(%arg0: i32) -> (i32, i32, i32) {
    %c0_i32 = arith.constant 0 : i32
    %c0_i32_0 = arith.constant 0 : i32
    %c0_i32_1 = arith.constant 0 : i32
    return %c0_i32, %c0_i32_0, %arg0 : i32, i32, i32
  }
  func.func @transform_1(%arg0: i32) -> (i32, i32) {
    %c0_i32 = arith.constant 0 : i32
    %c0_i32_0 = arith.constant 0 : i32
    return %c0_i32, %arg0 : i32, i32
  }
  func.func @transform_2(%arg0: i32) -> (i32, i32) {
    %c0_i32 = arith.constant 0 : i32
    %c0_i32_0 = arith.constant 0 : i32
    return %c0_i32, %arg0 : i32, i32
  }
}

</mosaic_0001>

<bundles_post_ra>
// kernel: tpu_custom_call.1
= control target key start
LH: loop header
LB: loop body
LE: loop exit
PB: predicated region body
PF: predicated region fallthrough
CT: control target
= control target key end

     0   :  { %7 = vsyncpa [#allocation3], 0  ;;  %s300_s0 = inlined_call_operand.hbm [shape: f32[5,17,128], index: 0, kind: input, shape index: {}]   ;;  %s301_s1 = inlined_call_operand.hbm [shape: f32[1,128], index: 1, kind: input, shape index: {}]   ;;  %s302_s2 = inlined_call_operand.hbm [shape: f32[1,128], index: 2, kind: output, shape index: {}]  }
   0x1   :  { %8 = vsyncpa [#allocation6], 0 }
   0x2   :  { %9 = vsyncpa [#allocation4], 0  ;;  %s14_s11 = sshll.u32 %s300_s0, 4  ;;  %s256_s12 = smov [#allocation2]   ;;  %s15_s11 = int_to_ptr.hbm [resolvable:$true] %s14_s11 }
   0x3   :  { %s16_s13 = sshll.u32 %s256_s12, 4  ;;  %s28_s16 = sshll.u32 %s301_s1, 4  ;;  %s17_s13 = int_to_ptr.vmem [resolvable:$true] %s16_s13  ;;  %s29_s16 = int_to_ptr.hbm [resolvable:$true] %s28_s16 }
   0x4   :  { %s257_s17 = smov 128   ;;  %s258_s18 = smov 8  }
   0x5   :  { %22 = dma.hbm_to_vmem [thread:$0]  %s15_s11, 1920, %s17_s13, [#allocation3], %s257_s17, %s257_s17, %s258_s18  }
   0x6   :  { %s259_s19 = smov [#allocation5]  }
   0x7   :  { %s30_s20 = sshll.u32 %s259_s19, 4  ;;  %s31_s20 = int_to_ptr.vmem [resolvable:$true] %s30_s20 }
   0x8   :  { %33 = dma.hbm_to_vmem [thread:$0]  %s29_s16, 16, %s31_s20, [#allocation6]  }
   0x9   :  { %250 = dma.done.wait [#allocation3], 1920  }
   0xa   :  { %251 = vsyncadd [#allocation3], 4294965376 }
   0xb   :  { %252 = dma.done.wait [#allocation6], 16  }
   0xc   :  { %253 = vsyncadd [#allocation6], 4294967280  ;;  %v283_v0 = vld [vmem:[#allocation2 + $0x60] sm:$0xff]  ;;  %v285_v1 = vld [vmem:[#allocation2 + $0x68] sm:$0xff]  ;;  %vm87_vm2 = vcmask 1040384   ;;  %v260_v10 = vmov 0.0  }
   0xd   :  { %v287_v2 = vld [vmem:[#allocation2 + $0x70] sm:$0x1]  ;;  %v61_v3 = vld [vmem:[#allocation5] sm:$0x1]  ;;  %vm77_vm0 = vcmp.ne.f32.partialorder %v283_v0, 0.0  ;;  %v42_v4 = vld [vmem:[#allocation2] sm:$0xff] }
   0xe   :  { %v43_v5 = vld [vmem:[#allocation2 + $0x8] sm:$0xff]  ;;  %v44_v6 = vld [vmem:[#allocation2 + $0x10] sm:$0x1]  ;;  %vm78_vm1 = vcmp.ne.f32.partialorder %v285_v1, 0.0  ;;  %v46_v7 = vld [vmem:[#allocation2 + $0x18] sm:$0xff]  ;;  %vm79_vm3 = vcmp.ne.f32.partialorder %v287_v2, 0.0 }
   0xf   :  { %v47_v8 = vld [vmem:[#allocation2 + $0x20] sm:$0xff]  ;;  %v48_v9 = vld [vmem:[#allocation2 + $0x28] sm:$0x1]  ;;  %v159_v11 = vsel %vm77_vm0, 1.0, %v260_v10  ;;  %v160_v12 = vsel %vm78_vm1, 1.0, %v260_v10  ;;  %v50_v14 = vld [vmem:[#allocation2 + $0x30] sm:$0xff] }
  0x10   :  { %v102_v13 = vadd.f32 1e-09, %v61_v3  ;;  %v51_v15 = vld [vmem:[#allocation2 + $0x38] sm:$0xff]  ;;  %v52_v16 = vld [vmem:[#allocation2 + $0x40] sm:$0x1]  ;;  %v161_v17 = vsel %vm79_vm3, 1.0, %v260_v10  ;;  %v86_v21 = vadd.f32 %v160_v12, %v159_v11  ;;  %v62_v23 = vsub.f32 %v42_v4, %v50_v14 }
  0x11   :  { %v54_v18 = vld [vmem:[#allocation2 + $0x48] sm:$0xff]  ;;  %v55_v19 = vld [vmem:[#allocation2 + $0x50] sm:$0xff]  ;;  %v56_v20 = vld [vmem:[#allocation2 + $0x58] sm:$0x1]  ;;  %v88_v22 = vsel %vm87_vm2, %v161_v17, 0.0  ;;  %v63_v24 = vsub.f32 %v43_v5, %v51_v15  ;;  %v64_v25 = vsub.f32 %v44_v6, %v52_v16  ;;  %s261_s0 = smov [#allocation7]  }
  0x12   :  { %168 = vrcp.f32 %v102_v13  ;;  %v89_v26 = vadd.f32 %v88_v22, %v86_v21  ;;  %v65_v27 = vsub.f32 %v46_v7, %v54_v18  ;;  %v66_v28 = vsub.f32 %v47_v8, %v55_v19  ;;  %s146_s1 = sshll.u32 %s261_s0, 4  ;;  %s148_s23 = sshll.u32 %s302_s2, 4  ;;  %s147_s1 = int_to_ptr.vmem [resolvable:$true] %s146_s1  ;;  %s149_s23 = int_to_ptr.hbm [resolvable:$true] %s148_s23 }
  0x13   :  { %v67_v29 = vsub.f32 %v48_v9, %v56_v20  ;;  %v68_v32 = vmul.f32 %v62_v23, %v62_v23  ;;  %v69_v33 = vmul.f32 %v63_v24, %v63_v24  ;;  %v70_v34 = vmul.f32 %v64_v25, %v64_v25 }
  0x14   :  { %v90_v30 = vrot.slane %v89_v26, 4  ;;  %v71_v36 = vmul.f32 %v65_v27, %v65_v27  ;;  %v72_v37 = vmul.f32 %v66_v28, %v66_v28 }
  0x15   :  { %v73_v38 = vmul.f32 %v67_v29, %v67_v29 }
  0x16   :  { %v91_v35 = vadd.f32 %v90_v30, %v89_v26  ;;  %v74_v43 = vadd.f32 %v71_v36, %v68_v32  ;;  %v75_v44 = vadd.f32 %v72_v37, %v69_v33 }
  0x17   :  { %v76_v45 = vadd.f32 %v73_v38, %v70_v34 }
  0x18   :  { %v169_v31 = vpop.eup %168  ;;  %v92_v40 = vrot.slane %v91_v35, 2 }
  0x19   :  { %v104_v39 = vmul.f32 %v169_v31, %v102_v13 }
  0x1a   :  { %v93_v42 = vadd.f32 %v92_v40, %v91_v35 }
  0x1b   :  { %v105_v41 = vsub.f32 2.0, %v104_v39 }
  0x1c   :  { %v94_v47 = vrot.slane %v93_v42, 1 }
  0x1d   :  { %v106_v46 = vmul.f32 %v169_v31, %v105_v41 }
  0x1e   :  { %v95_v49 = vadd.f32 %v94_v47, %v93_v42 }
  0x1f   :  { %v108_v48 = vperm.slane %v106_v46, 0 }
  0x20   :  { %v96_v53 = vadd.f32 1e-09, %v95_v49 }
  0x21   :  { %v110_v50 = vmul.f32 %v108_v48, %v74_v43  ;;  %v111_v51 = vmul.f32 %v108_v48, %v75_v44  ;;  %v112_v52 = vmul.f32 %v108_v48, %v76_v45 }
  0x22   :  { %170 = vrcp.f32 %v96_v53 }
  0x23   :  { %v113_v54 = vsub.f32 0.0, %v110_v50  ;;  %v114_v55 = vsub.f32 0.0, %v111_v51  ;;  %v115_v56 = vsub.f32 0.0, %v112_v52 }
  0x25   :  { %v116_v57 = vmul.f32 1.442695, %v113_v54  ;;  %v118_v58 = vmul.f32 1.442695, %v114_v55  ;;  %v120_v59 = vmul.f32 1.442695, %v115_v56 }
  0x27   :  { %172 = vpow2.f32 %v116_v57 }
  0x28   :  { %174 = vpow2.f32 %v118_v58  ;;  %v171_v60 = vpop.eup %170 }
  0x29   :  { %176 = vpow2.f32 %v120_v59  ;;  %v98_v61 = vmul.f32 %v171_v60, %v96_v53 }
  0x2b   :  { %v99_v63 = vsub.f32 2.0, %v98_v61 }
  0x2d   :  { %v173_v62 = vpop.eup %172  ;;  %v100_v6 = vmul.f32 %v171_v60, %v99_v63 }
  0x2e   :  { %v175_v3 = vpop.eup %174  ;;  %v122_v4 = vsub.f32 1.0, %v173_v62 }
  0x2f   :  { %v177_v5 = vpop.eup %176  ;;  %v123_v7 = vsub.f32 1.0, %v175_v3  ;;  %v101_v10 = vmul.f32 17.0, %v100_v6 }
  0x30   :  { %v124_v8 = vsub.f32 1.0, %v177_v5  ;;  %v125_v9 = vmul.f32 %v122_v4, %v283_v0 }
  0x31   :  { %v126_v11 = vmul.f32 %v123_v7, %v285_v1 }
  0x32   :  { %v127_v12 = vmul.f32 %v124_v8, %v287_v2  ;;  %v128_v13 = vmul.f32 %v125_v9, %v101_v10 }
  0x33   :  { %v129_v14 = vmul.f32 %v126_v11, %v101_v10 }
  0x34   :  { %v130_v15 = vmul.f32 %v127_v12, %v101_v10 }
  0x35   :  { %v131_v16 = vadd.f32 %v129_v14, %v128_v13 }
  0x36   :  { %v132_v17 = vsel %vm87_vm2, %v130_v15, 0.0 }
  0x37   :  { %v133_v18 = vadd.f32 %v132_v17, %v131_v16 }
  0x39   :  { %v134_v19 = vrot.slane %v133_v18, 4 }
  0x3b   :  { %v135_v20 = vadd.f32 %v134_v19, %v133_v18 }
  0x3d   :  { %v136_v21 = vrot.slane %v135_v20, 2 }
  0x3f   :  { %v137_v22 = vadd.f32 %v136_v21, %v135_v20 }
  0x41   :  { %v138_v0 = vrot.slane %v137_v22, 1 }
  0x43   :  { %v139_v1 = vadd.f32 %v138_v0, %v137_v22 }
  0x45   :  { %140 = vst [vmem:[#allocation7] sm:$0x1] %v139_v1 }
  0x46   :  { %151 = dma.vmem_to_hbm [thread:$0]  %s147_s1, 16, %s149_s23, [#allocation4]  }
  0x47   :  { %254 = dma.done.wait [#allocation4], 16  }
  0x48   :  { %255 = vsyncadd [#allocation4], 4294967280 }
  0x49   :  { %156 = vsyncpa [#allocation3], 1 }
  0x4a   :  { %157 = vsyncpa [#allocation6], 1 }
  0x4b   :  { %158 = vsyncpa [#allocation4], 1 }

</bundles_post_ra>
